<compile_context>
chip_gen: v6e
topology: v6e:2x2x1
jax: 0.10.0
libtpu: 0.0.40
codegen_flags: <defaults>
</compile_context>

<pallas_src>
import functools

import jax
import jax.numpy as jnp
import numpy as np
from jax.experimental import pallas as pl
from jax.experimental.pallas import tpu as pltpu


def _truncation_kernel(w_ref, coef_ref, wavg_ref, o_ref):
    # w_ref:    (TB, F) per-grid-step batch block
    # coef_ref: (1, F)  resident per-layer truncation coefficients
    # wavg_ref: (1, F)  resident w_avg tiled across layers
    # out = w_avg + (w - w_avg) * coef    (same form / rounding as PyTorch)
    w = w_ref[...].astype(jnp.float32)
    w_avg = wavg_ref[...]
    coef = coef_ref[...]
    o_ref[...] = (w_avg + (w - w_avg) * coef).astype(o_ref.dtype)


@functools.partial(jax.jit, static_argnames=("truncation_psi", "truncation_layers"))
def truncation_forward(w, w_avg, *, truncation_psi=0.7, truncation_layers=8):
    """TruncationModule forward.

    w:     (N, num_layers, w_space_dim) latent codes
    w_avg: (w_space_dim,) running-average buffer
    Returns (N, num_layers, w_space_dim) in w.dtype.
    """
    N, L, D = w.shape
    assert w_avg.shape == (D,)
    F = L * D  # flattened minor dim; multiple of 128 for D = 512

    # Per-layer truncation coefficients (matches the PyTorch buffer exactly).
    coef_np = np.ones((L,), np.float32)
    coef_np[:truncation_layers] *= truncation_psi
    coef_l = jnp.asarray(coef_np)

    # Batch-invariant (1, F) rows, precomputed once and kept VMEM-resident.
    coef_row = jnp.broadcast_to(coef_l[:, None], (L, D)).reshape(1, F)
    wavg_row = jnp.broadcast_to(
        w_avg.astype(jnp.float32)[None, :], (L, D)).reshape(1, F)

    # Flatten w to a fully dense (N, F) layout (free reshape; undone below).
    w_flat = w.reshape(N, F)

    # Rows per grid step: ~1.8 MiB blocks for large N, single block for tiny N.
    TB = N if N <= 64 else 64
    grid = (pl.cdiv(N, TB),)

    itemsize = jnp.dtype(w.dtype).itemsize
    cost = pl.CostEstimate(
        flops=3 * N * F,
        transcendentals=0,
        bytes_accessed=2 * N * F * itemsize + 2 * F * 4,
    )

    out_flat = pl.pallas_call(
        _truncation_kernel,
        out_shape=jax.ShapeDtypeStruct((N, F), w.dtype),
        grid=grid,
        in_specs=[
            pl.BlockSpec((TB, F), lambda n: (n, 0)),   # per-step batch block
            pl.BlockSpec((1, F), lambda n: (0, 0)),    # coef row (resident)
            pl.BlockSpec((1, F), lambda n: (0, 0)),    # w_avg row (resident)
        ],
        out_specs=pl.BlockSpec((TB, F), lambda n: (n, 0)),
        compiler_params=pltpu.CompilerParams(
            dimension_semantics=("parallel",)),
        cost_estimate=cost,
    )(w_flat, coef_row, wavg_row)

    return out_flat.reshape(N, L, D)


def reference_forward(w, w_avg, truncation_psi=0.7, truncation_layers=8):
    """Pure-JAX reference mirroring the PyTorch module."""
    N, L, D = w.shape
    layer_idx = np.arange(L).reshape(1, L, 1)
    coefs = np.ones_like(layer_idx, dtype=np.float32)
    coefs[layer_idx < truncation_layers] *= truncation_psi
    coefs = jnp.asarray(coefs)
    w_avg_b = w_avg.reshape(1, 1, D)
    return w_avg_b + (w - w_avg_b) * coefs


if __name__ == "__main__":
    # Small shapes consistent with the module: batch=2, StyleGAN-style
    # num_layers=14, w_space_dim=512 (module default), truncation_layers=8.
    N, num_layers, w_space_dim = 2, 14, 512
    truncation_psi, truncation_layers = 0.7, 8

    key = jax.random.PRNGKey(0)
    kw, ka = jax.random.split(key, 2)
    w = jax.random.normal(kw, (N, num_layers, w_space_dim), jnp.float32)
    # w_avg is a zeros buffer at init but gets EMA-updated in training; use a
    # nonzero value here so the full expression is exercised.
    w_avg = jax.random.normal(ka, (w_space_dim,), jnp.float32) * 0.1

    out = truncation_forward(w, w_avg, truncation_psi=truncation_psi,
                             truncation_layers=truncation_layers)
    out = jax.block_until_ready(out)

    ref = jax.block_until_ready(
        reference_forward(w, w_avg, truncation_psi, truncation_layers))
    assert out.shape == (N, num_layers, w_space_dim), out.shape
    np.testing.assert_allclose(np.asarray(out), np.asarray(ref),
                               rtol=1e-6, atol=1e-6)
    print("KERNEL_OK")
</pallas_src>

<mosaic_0001>
module attributes {stable_mosaic.version = 11 : i64} {
  func.func @_truncation_kernel(%arg0: i32, %arg1: memref<2x7168xf32, #tpu.memory_space<vmem>>, %arg2: memref<1x7168xf32, #tpu.memory_space<vmem>>, %arg3: memref<1x7168xf32, #tpu.memory_space<vmem>>, %arg4: memref<2x7168xf32, #tpu.memory_space<vmem>>) attributes {dimension_semantics = [#tpu.dimension_semantics<parallel>], iteration_bounds = array<i64: 1>, scalar_prefetch = 0 : i64, scratch_operands = 0 : i64, tpu.core_type = #tpu.core_type<tc>, window_params = [{transform_indices = @transform_0, window_bounds = array<i64: 2, 7168>}, {pipeline_mode = #tpu.pipeline_mode<synchronous>, transform_indices = @transform_1, window_bounds = array<i64: 1, 7168>}, {pipeline_mode = #tpu.pipeline_mode<synchronous>, transform_indices = @transform_2, window_bounds = array<i64: 1, 7168>}, {transform_indices = @transform_3, window_bounds = array<i64: 2, 7168>}]} {
    %c0 = arith.constant 0 : index
    %c0_0 = arith.constant 0 : index
    %0 = vector.load %arg1[%c0, %c0_0] : memref<2x7168xf32, #tpu.memory_space<vmem>>, vector<2x7168xf32>
    %c0_1 = arith.constant 0 : index
    %c0_2 = arith.constant 0 : index
    %1 = vector.load %arg3[%c0_1, %c0_2] : memref<1x7168xf32, #tpu.memory_space<vmem>>, vector<1x7168xf32>
    %c0_3 = arith.constant 0 : index
    %c0_4 = arith.constant 0 : index
    %2 = vector.load %arg2[%c0_3, %c0_4] : memref<1x7168xf32, #tpu.memory_space<vmem>>, vector<1x7168xf32>
    %3 = vector.broadcast %1 : vector<1x7168xf32> to vector<2x7168xf32>
    %4 = arith.subf %0, %3 : vector<2x7168xf32>
    %5 = vector.broadcast %2 : vector<1x7168xf32> to vector<2x7168xf32>
    %6 = arith.mulf %4, %5 : vector<2x7168xf32>
    %7 = vector.broadcast %1 : vector<1x7168xf32> to vector<2x7168xf32>
    %8 = arith.addf %7, %6 : vector<2x7168xf32>
    %c0_5 = arith.constant 0 : index
    %c0_6 = arith.constant 0 : index
    %9 = vector.load %arg4[%c0_5, %c0_6] : memref<2x7168xf32, #tpu.memory_space<vmem>>, vector<2x7168xf32>
    tpu.vector_store %arg4[%c0_5, %c0_6], %8 {strides = array<i32>} : memref<2x7168xf32, #tpu.memory_space<vmem>>, vector<2x7168xf32>,
    return
  }
  func.func @transform_0(%arg0: i32) -> (i32, i32) {
    %c0_i32 = arith.constant 0 : i32
    %c0_i32_0 = arith.constant 0 : i32
    return %arg0, %c0_i32 : i32, i32
  }
  func.func @transform_1(%arg0: i32) -> (i32, i32) {
    %c0_i32 = arith.constant 0 : i32
    %c0_i32_0 = arith.constant 0 : i32
    %c0_i32_1 = arith.constant 0 : i32
    return %c0_i32, %c0_i32_0 : i32, i32
  }
  func.func @transform_2(%arg0: i32) -> (i32, i32) {
    %c0_i32 = arith.constant 0 : i32
    %c0_i32_0 = arith.constant 0 : i32
    %c0_i32_1 = arith.constant 0 : i32
    return %c0_i32, %c0_i32_0 : i32, i32
  }
  func.func @transform_3(%arg0: i32) -> (i32, i32) {
    %c0_i32 = arith.constant 0 : i32
    %c0_i32_0 = arith.constant 0 : i32
    return %arg0, %c0_i32 : i32, i32
  }
}

</mosaic_0001>

<bundles_post_ra>
// kernel: truncation_forward.1
= control target key start
LH: loop header
LB: loop body
LE: loop exit
PB: predicated region body
PF: predicated region fallthrough
CT: control target
= control target key end

     0   :  { %v50_v0 = vlaneseq  ;;  %v1817_v1 = vmov 1983009808   ;;  %s2460_s0 = inlined_call_operand.vmem [shape: f32[2,7168], index: 0, kind: input, shape index: {}]   ;;  %s2461_s1 = inlined_call_operand.vmem [shape: f32[1,7168], index: 1, kind: input, shape index: {}]   ;;  %s2462_s2 = inlined_call_operand.vmem [shape: f32[1,7168], index: 2, kind: input, shape index: {}]   ;;  %s2463_s3 = inlined_call_operand.hbm [shape: f32[2,7168], index: 3, kind: output, shape index: {}]  }
   0x1   :  { %v333_v2 = vunpack.c.l.s4 %v1817_v1  ;;  %v29_v4 = vld [vmem:[%s2462_s2] sm:$0xff] }
   0x2   :  { %v51_v3 = vshrl.u32 %v50_v0, 7  ;;  %v36_v6 = vld [vmem:[%s2461_s1] sm:$0xff] }
   0x3   :  { %v334_v5 = vunpack.c.0.s8 %v333_v2 }
   0x4   :  { %v1845_v7 = vsub.s32 0, %v51_v3  ;;  %v1847_v8 = vsub.s32 1, %v51_v3  ;;  %v1849_v9 = vsub.s32 2, %v51_v3  ;;  %v1851_v10 = vsub.s32 3, %v51_v3 }
   0x5   :  { %v1853_v11 = vsub.s32 %v334_v5, %v51_v3  ;;  %v1855_v12 = vsub.s32 4, %v51_v3  ;;  %v1857_v13 = vsub.s32 5, %v51_v3  ;;  %v1859_v14 = vsub.s32 6, %v51_v3 }
   0x6   :  { %v1862_v15 = vrot.slane %v29_v4, %v1845_v7  ;;  %v1865_v16 = vrot.slane %v29_v4, %v1847_v8  ;;  %v1868_v17 = vrot.slane %v29_v4, %v1849_v9  ;;  %v1871_v18 = vrot.slane %v29_v4, %v1851_v10 }
   0x7   :  { %v606_v19 = vrot.slane %v36_v6, %v1845_v7  ;;  %v610_v20 = vrot.slane %v36_v6, %v1847_v8  ;;  %v614_v21 = vrot.slane %v36_v6, %v1849_v9  ;;  %v618_v22 = vrot.slane %v36_v6, %v1851_v10 }
   0x8   :  { %v330_v23 = vcombine.low %v1862_v15, %v1865_v16  ;;  %v331_v24 = vcombine.low %v1868_v17, %v1871_v18  ;;  %v1882_v25 = vrot.slane %v29_v4, %v1855_v12  ;;  %v1885_v26 = vrot.slane %v29_v4, %v1857_v13 }
   0x9   :  { %v827_v27 = vcombine.low %v606_v19, %v610_v20  ;;  %v828_v28 = vcombine.low %v614_v21, %v618_v22  ;;  %v1888_v29 = vrot.slane %v29_v4, %v1859_v14  ;;  %v1890_v30 = vsub.s32 7, %v51_v3 }
   0xa   :  { %8 = vsyncpa [#allocation3], 0  ;;  %v338_v31 = vrot.slane %v330_v23, %v1853_v11  ;;  %v345_v32 = vrot.slane %v331_v24, %v1853_v11  ;;  %v347_v33 = vcombine.low %v1882_v25, %v1885_v26  ;;  %v622_v34 = vrot.slane %v36_v6, %v1855_v12  ;;  %v30_v35 = vld [vmem:[%s2462_s2 + $0x8] sm:$0xff]  ;;  %v15_v36 = vld [vmem:[%s2460_s0] sm:$0xff] }
   0xb   :  { %v835_v37 = vrot.slane %v827_v27, %v1853_v11  ;;  %v842_v38 = vrot.slane %v828_v28, %v1853_v11  ;;  %v1906_v39 = vrot.slane %v29_v4, %v1890_v30  ;;  %v626_v40 = vrot.slane %v36_v6, %v1857_v13  ;;  %v1915_v45 = vld [vmem:[%s2461_s1 + $0x8] sm:$0xff]  ;;  %v17_v28 = vld [vmem:[%s2460_s0 + $0x10] sm:$0xff] }
   0xc   :  { %v346_v41 = vcombine.low %v338_v31, %v345_v32  ;;  %v355_v42 = vrot.slane %v347_v33, %v1853_v11  ;;  %v630_v43 = vrot.slane %v36_v6, %v1859_v14  ;;  %v634_v44 = vrot.slane %v36_v6, %v1890_v30  ;;  %v16_v59 = vld [vmem:[%s2460_s0 + $0x8] sm:$0xff] }
   0xd   :  { %v843_v46 = vcombine.low %v835_v37, %v842_v38  ;;  %v348_v47 = vcombine.low %v1888_v29, %v1906_v39  ;;  %v844_v48 = vcombine.low %v622_v34, %v626_v40  ;;  %v1920_v49 = vrot.slane %v30_v35, %v1845_v7 }
   0xe   :  { %v582_v50 = vsub.f32 %v15_v36, %v346_v41  ;;  %v845_v51 = vcombine.low %v630_v43, %v634_v44  ;;  %v1923_v52 = vrot.slane %v30_v35, %v1847_v8  ;;  %v1926_v53 = vrot.slane %v30_v35, %v1849_v9 }
   0xf   :  { %v362_v54 = vrot.slane %v348_v47, %v1853_v11  ;;  %v852_v55 = vrot.slane %v844_v48, %v1853_v11  ;;  %v1931_v56 = vrot.slane %v30_v35, %v1851_v10  ;;  %v638_v57 = vrot.slane %v1915_v45, %v1845_v7 }
  0x10   :  { %v1079_v58 = vmul.f32 %v843_v46, %v582_v50  ;;  %v859_v60 = vrot.slane %v845_v51, %v1853_v11  ;;  %v364_v61 = vcombine.low %v1920_v49, %v1923_v52  ;;  %v642_v62 = vrot.slane %v1915_v45, %v1847_v8 }
  0x11   :  { %v363_v63 = vcombine.low %v355_v42, %v362_v54  ;;  %v365_v0 = vcombine.low %v1926_v53, %v1931_v56  ;;  %v646_v1 = vrot.slane %v1915_v45, %v1849_v9  ;;  %v650_v2 = vrot.slane %v1915_v45, %v1851_v10 }
  0x12   :  { %v1107_v3 = vcombine.high %v1079_v58, %v1079_v58  ;;  %v1114_v4 = vrot.slane %v1079_v58, %v1853_v11  ;;  %v860_v5 = vcombine.low %v852_v55, %v859_v60  ;;  %v372_v6 = vrot.slane %v364_v61, %v1853_v11 }
  0x13   :  { %v583_v19 = vsub.f32 %v16_v59, %v363_v63  ;;  %v379_v20 = vrot.slane %v365_v0, %v1853_v11  ;;  %v861_v21 = vcombine.low %v638_v57, %v642_v62  ;;  %v862_v22 = vcombine.low %v646_v1, %v650_v2 }
  0x14   :  { %v1121_v23 = vrot.slane %v1107_v3, %v1853_v11  ;;  %v1122_v24 = vcombine.high %v1114_v4, %v1114_v4  ;;  %v1401_v27 = vadd.f32 %v1114_v4, %v1862_v15  ;;  %v1958_v31 = vrot.slane %v30_v35, %v1855_v12 }
  0x15   :  { %v1080_v32 = vmul.f32 %v860_v5, %v583_v19  ;;  %v380_v33 = vcombine.low %v372_v6, %v379_v20  ;;  %v869_v34 = vrot.slane %v861_v21, %v1853_v11  ;;  %v876_v36 = vrot.slane %v862_v22, %v1853_v11  ;;  %v31_v20 = vld [vmem:[%s2462_s2 + $0x10] sm:$0xff] }
  0x16   :  { %v1123_v37 = vcombine.high %v1121_v23, %v1121_v23  ;;  %v1402_v38 = vadd.f32 %v1122_v24, %v1865_v16  ;;  %v1403_v40 = vadd.f32 %v1121_v23, %v1868_v17  ;;  %v1965_v15 = vrot.slane %v30_v35, %v1857_v13 }
  0x17   :  { %v1124_v41 = vcombine.high %v1080_v32, %v1080_v32  ;;  %v1131_v42 = vrot.slane %v1080_v32, %v1853_v11  ;;  %v584_v43 = vsub.f32 %v17_v28, %v380_v33  ;;  %v877_v44 = vcombine.low %v869_v34, %v876_v36 }
  0x18   :  { %v1404_v46 = vadd.f32 %v1123_v37, %v1871_v18  ;;  %v1513_v47 = vcombine.low %v1401_v27, %v1402_v38  ;;  %v1970_v48 = vrot.slane %v30_v35, %v1859_v14  ;;  %v1973_v50 = vrot.slane %v30_v35, %v1890_v30 }
  0x19   :  { %v1138_v16 = vrot.slane %v1124_v41, %v1853_v11  ;;  %v1139_v17 = vcombine.high %v1131_v42, %v1131_v42  ;;  %v1405_v51 = vadd.f32 %v1131_v42, %v1882_v25  ;;  %v1081_v54 = vmul.f32 %v877_v44, %v584_v43 }
  0x1a   :  { %v1514_v55 = vcombine.low %v1403_v40, %v1404_v46  ;;  %v1521_v57 = vrot.slane %v1513_v47, %v1853_v11  ;;  %v381_v58 = vcombine.low %v1958_v31, %v1965_v15  ;;  %v382_v18 = vcombine.low %v1970_v48, %v1973_v50 }
  0x1b   :  { %v1140_v59 = vcombine.high %v1138_v16, %v1138_v16  ;;  %v1406_v60 = vadd.f32 %v1139_v17, %v1885_v26  ;;  %v1407_v35 = vadd.f32 %v1138_v16, %v1888_v29  ;;  %v1141_v61 = vcombine.high %v1081_v54, %v1081_v54  ;;  %v18_v26 = vld [vmem:[%s2460_s0 + $0x18] sm:$0xff] }
  0x1c   :  { %v1528_v62 = vrot.slane %v1514_v55, %v1853_v11  ;;  %v1148_v25 = vrot.slane %v1081_v54, %v1853_v11  ;;  %v389_v63 = vrot.slane %v381_v58, %v1853_v11  ;;  %v396_v0 = vrot.slane %v382_v18, %v1853_v11 }
  0x1d   :  { %v1408_v1 = vadd.f32 %v1140_v59, %v1906_v39  ;;  %v1530_v2 = vcombine.low %v1405_v51, %v1406_v60  ;;  %v1155_v3 = vrot.slane %v1141_v61, %v1853_v11  ;;  %v654_v29 = vrot.slane %v1915_v45, %v1855_v12 }
  0x1e   :  { %v1529_v4 = vcombine.low %v1521_v57, %v1528_v62  ;;  %v1156_v5 = vcombine.high %v1148_v25, %v1148_v25  ;;  %v1409_v6 = vadd.f32 %v1148_v25, %v1920_v49  ;;  %v397_v19 = vcombine.low %v389_v63, %v396_v0  ;;  %v19_v62 = vld [vmem:[%s2460_s0 + $0x20] sm:$0xff] }
  0x1f   :  { %v1531_v39 = vcombine.low %v1407_v35, %v1408_v1  ;;  %v1538_v21 = vrot.slane %v1530_v2, %v1853_v11  ;;  %v1157_v22 = vcombine.high %v1155_v3, %v1155_v3  ;;  %v1411_v23 = vadd.f32 %v1155_v3, %v1926_v53  ;;  %v38_v53 = vld [vmem:[%s2461_s1 + $0x10] sm:$0xff] }
  0x20   :  { %1765 = vst [vmem:[#allocation2] sm:$0xff] %v1529_v4  ;;  %v1410_v24 = vadd.f32 %v1156_v5, %v1923_v52  ;;  %v585_v27 = vsub.f32 %v18_v26, %v397_v19  ;;  %v658_v28 = vrot.slane %v1915_v45, %v1857_v13  ;;  %v662_v49 = vrot.slane %v1915_v45, %v1859_v14 }
  0x21   :  { %v1545_v32 = vrot.slane %v1531_v39, %v1853_v11  ;;  %v1412_v33 = vadd.f32 %v1157_v22, %v1931_v56  ;;  %v666_v34 = vrot.slane %v1915_v45, %v1890_v30  ;;  %v2014_v52 = vrot.slane %v31_v20, %v1845_v7 }
  0x22   :  { %v1547_v36 = vcombine.low %v1409_v6, %v1410_v24  ;;  %v878_v37 = vcombine.low %v654_v29, %v658_v28  ;;  %v2017_v38 = vrot.slane %v31_v20, %v1847_v8  ;;  %v2020_v40 = vrot.slane %v31_v20, %v1849_v9 }
  0x23   :  { %v1546_v41 = vcombine.low %v1538_v21, %v1545_v32  ;;  %v1548_v56 = vcombine.low %v1411_v23, %v1412_v33  ;;  %v879_v42 = vcombine.low %v662_v49, %v666_v34  ;;  %v2023_v45 = vrot.slane %v31_v20, %v1851_v10  ;;  %v2067_v23 = vld [vmem:[%s2462_s2 + $0x18] sm:$0xff] }
  0x24   :  { %v1555_v43 = vrot.slane %v1547_v36, %v1853_v11  ;;  %v886_v44 = vrot.slane %v878_v37, %v1853_v11  ;;  %v398_v46 = vcombine.low %v2014_v52, %v2017_v38  ;;  %v670_v47 = vrot.slane %v38_v53, %v1845_v7  ;;  %v20_v36 = vld [vmem:[%s2460_s0 + $0x28] sm:$0xff] }
  0x25   :  { %1766 = vst [vmem:[#allocation2 + $0x8] sm:$0xff] %v1546_v41  ;;  %v1562_v16 = vrot.slane %v1548_v56, %v1853_v11  ;;  %v893_v17 = vrot.slane %v879_v42, %v1853_v11  ;;  %v399_v51 = vcombine.low %v2020_v40, %v2023_v45  ;;  %v674_v54 = vrot.slane %v38_v53, %v1847_v8 }
  0x26   :  { %v406_v55 = vrot.slane %v398_v46, %v1853_v11  ;;  %v678_v57 = vrot.slane %v38_v53, %v1849_v9  ;;  %v682_v58 = vrot.slane %v38_v53, %v1851_v10  ;;  %v2039_v18 = vrot.slane %v31_v20, %v1855_v12 }
  0x27   :  { %v1563_v59 = vcombine.low %v1555_v43, %v1562_v16  ;;  %v894_v60 = vcombine.low %v886_v44, %v893_v17  ;;  %v413_v35 = vrot.slane %v399_v51, %v1853_v11  ;;  %v895_v61 = vcombine.low %v670_v47, %v674_v54 }
  0x28   :  { %v896_v25 = vcombine.low %v678_v57, %v682_v58  ;;  %v2046_v63 = vrot.slane %v31_v20, %v1857_v13  ;;  %v2049_v0 = vrot.slane %v31_v20, %v1859_v14  ;;  %v2052_v1 = vrot.slane %v31_v20, %v1890_v30 }
  0x29   :  { %1767 = vst [vmem:[#allocation2 + $0x10] sm:$0xff] %v1563_v59  ;;  %v1082_v2 = vmul.f32 %v894_v60, %v585_v27  ;;  %v414_v3 = vcombine.low %v406_v55, %v413_v35  ;;  %v903_v26 = vrot.slane %v895_v61, %v1853_v11  ;;  %v686_v29 = vrot.slane %v38_v53, %v1855_v12  ;;  %v2100_v35 = vld [vmem:[%s2461_s1 + $0x18] sm:$0xff] }
  0x2a   :  { %v910_v4 = vrot.slane %v896_v25, %v1853_v11  ;;  %v415_v5 = vcombine.low %v2039_v18, %v2046_v63  ;;  %v416_v6 = vcombine.low %v2049_v0, %v2052_v1  ;;  %v690_v19 = vrot.slane %v38_v53, %v1857_v13 }
  0x2b   :  { %v1158_v39 = vcombine.high %v1082_v2, %v1082_v2  ;;  %v1165_v20 = vrot.slane %v1082_v2, %v1853_v11  ;;  %v586_v21 = vsub.f32 %v19_v62, %v414_v3  ;;  %v694_v22 = vrot.slane %v38_v53, %v1859_v14 }
  0x2c   :  { %v911_v24 = vcombine.low %v903_v26, %v910_v4  ;;  %v423_v27 = vrot.slane %v415_v5, %v1853_v11  ;;  %v430_v28 = vrot.slane %v416_v6, %v1853_v11  ;;  %v698_v49 = vrot.slane %v38_v53, %v1890_v30 }
  0x2d   :  { %v1172_v32 = vrot.slane %v1158_v39, %v1853_v11  ;;  %v1173_v33 = vcombine.high %v1165_v20, %v1165_v20  ;;  %v1413_v34 = vadd.f32 %v1165_v20, %v1958_v31  ;;  %v912_v37 = vcombine.low %v686_v29, %v690_v19 }
  0x2e   :  { %v1083_v41 = vmul.f32 %v911_v24, %v586_v21  ;;  %v431_v56 = vcombine.low %v423_v27, %v430_v28  ;;  %v913_v42 = vcombine.low %v694_v22, %v698_v49  ;;  %v2079_v43 = vrot.slane %v2067_v23, %v1845_v7 }
  0x2f   :  { %v1174_v44 = vcombine.high %v1172_v32, %v1172_v32  ;;  %v1414_v53 = vadd.f32 %v1173_v33, %v1965_v15  ;;  %v1415_v46 = vadd.f32 %v1172_v32, %v1970_v48  ;;  %v920_v47 = vrot.slane %v912_v37, %v1853_v11 }
  0x30   :  { %v1175_v31 = vcombine.high %v1083_v41, %v1083_v41  ;;  %v1182_v16 = vrot.slane %v1083_v41, %v1853_v11  ;;  %v587_v17 = vsub.f32 %v20_v36, %v431_v56  ;;  %v927_v51 = vrot.slane %v913_v42, %v1853_v11 }
  0x31   :  { %v1416_v54 = vadd.f32 %v1174_v44, %v1973_v50  ;;  %v1564_v55 = vcombine.low %v1413_v34, %v1414_v53  ;;  %v2089_v57 = vrot.slane %v2067_v23, %v1847_v8  ;;  %v2093_v15 = vrot.slane %v2067_v23, %v1849_v9 }
  0x32   :  { %v1189_v48 = vrot.slane %v1175_v31, %v1853_v11  ;;  %v1190_v58 = vcombine.high %v1182_v16, %v1182_v16  ;;  %v1417_v59 = vadd.f32 %v1182_v16, %v2014_v52  ;;  %v928_v60 = vcombine.low %v920_v47, %v927_v51 }
  0x33   :  { %v1565_v50 = vcombine.low %v1415_v46, %v1416_v54  ;;  %v1572_v61 = vrot.slane %v1564_v55, %v1853_v11  ;;  %v2105_v62 = vrot.slane %v2067_v23, %v1851_v10  ;;  %v432_v25 = vcombine.low %v2079_v43, %v2089_v57 }
  0x34   :  { %v1191_v2 = vcombine.high %v1189_v48, %v1189_v48  ;;  %v1418_v3 = vadd.f32 %v1190_v58, %v2017_v38  ;;  %v1419_v52 = vadd.f32 %v1189_v48, %v2020_v40  ;;  %v1084_v26 = vmul.f32 %v928_v60, %v587_v17 }
  0x35   :  { %v1579_v29 = vrot.slane %v1565_v50, %v1853_v11  ;;  %v433_v4 = vcombine.low %v2093_v15, %v2105_v62  ;;  %v440_v5 = vrot.slane %v432_v25, %v1853_v11  ;;  %v702_v6 = vrot.slane %v2100_v35, %v1845_v7 }
  0x36   :  { %v1420_v19 = vadd.f32 %v1191_v2, %v2023_v45  ;;  %v1581_v39 = vcombine.low %v1417_v59, %v1418_v3  ;;  %v1192_v20 = vcombine.high %v1084_v26, %v1084_v26  ;;  %v1199_v21 = vrot.slane %v1084_v26, %v1853_v11  ;;  %v21_v45 = vld [vmem:[%s2460_s0 + $0x30] sm:$0xff] }
  0x37   :  { %v1580_v38 = vcombine.low %v1572_v61, %v1579_v29  ;;  %v447_v40 = vrot.slane %v433_v4, %v1853_v11  ;;  %v706_v22 = vrot.slane %v2100_v35, %v1847_v8  ;;  %v710_v24 = vrot.slane %v2100_v35, %v1849_v9 }
  0x38   :  { %v1582_v27 = vcombine.low %v1419_v52, %v1420_v19  ;;  %v1589_v28 = vrot.slane %v1581_v39, %v1853_v11  ;;  %v1206_v49 = vrot.slane %v1192_v20, %v1853_v11  ;;  %v1207_v32 = vcombine.high %v1199_v21, %v1199_v21  ;;  %v22_v39 = vld [vmem:[%s2460_s0 + $0x38] sm:$0xff] }
  0x39   :  { %1768 = vst [vmem:[#allocation2 + $0x18] sm:$0xff] %v1580_v38  ;;  %v1421_v33 = vadd.f32 %v1199_v21, %v2039_v18  ;;  %v448_v34 = vcombine.low %v440_v5, %v447_v40  ;;  %v714_v36 = vrot.slane %v2100_v35, %v1851_v10  ;;  %v929_v37 = vcombine.low %v702_v6, %v706_v22  ;;  %v2182_v6 = vld [vmem:[%s2461_s1 + $0x20] sm:$0xff] }
  0x3a   :  { %v1596_v41 = vrot.slane %v1582_v27, %v1853_v11  ;;  %v1208_v56 = vcombine.high %v1206_v49, %v1206_v49  ;;  %v1422_v42 = vadd.f32 %v1207_v32, %v2046_v63  ;;  %v1423_v44 = vadd.f32 %v1206_v49, %v2049_v0 }
  0x3b   :  { %v588_v53 = vsub.f32 %v21_v45, %v448_v34  ;;  %v930_v46 = vcombine.low %v710_v24, %v714_v36  ;;  %v937_v47 = vrot.slane %v929_v37, %v1853_v11  ;;  %v2138_v31 = vrot.slane %v2067_v23, %v1855_v12 }
  0x3c   :  { %v1597_v18 = vcombine.low %v1589_v28, %v1596_v41  ;;  %v1424_v16 = vadd.f32 %v1208_v56, %v2052_v1  ;;  %v1598_v17 = vcombine.low %v1421_v33, %v1422_v42  ;;  %v2143_v51 = vrot.slane %v2067_v23, %v1857_v13  ;;  %v2159_v1 = vld [vmem:[%s2462_s2 + $0x20] sm:$0xff] }
  0x3d   :  { %v944_v63 = vrot.slane %v930_v46, %v1853_v11  ;;  %v2148_v0 = vrot.slane %v2067_v23, %v1859_v14  ;;  %v2152_v54 = vrot.slane %v2067_v23, %v1890_v30  ;;  %v718_v55 = vrot.slane %v2100_v35, %v1855_v12 }
  0x3e   :  { %1769 = vst [vmem:[#allocation2 + $0x20] sm:$0xff] %v1597_v18  ;;  %v1599_v48 = vcombine.low %v1423_v44, %v1424_v16  ;;  %v1606_v58 = vrot.slane %v1598_v17, %v1853_v11  ;;  %v449_v59 = vcombine.low %v2138_v31, %v2143_v51  ;;  %v722_v60 = vrot.slane %v2100_v35, %v1857_v13  ;;  %v23_v18 = vld [vmem:[%s2460_s0 + $0x40] sm:$0xff] }
  0x3f   :  { %v945_v23 = vcombine.low %v937_v47, %v944_v63  ;;  %v450_v50 = vcombine.low %v2148_v0, %v2152_v54  ;;  %v726_v61 = vrot.slane %v2100_v35, %v1859_v14  ;;  %v730_v25 = vrot.slane %v2100_v35, %v1890_v30 }
  0x40   :  { %v1613_v2 = vrot.slane %v1599_v48, %v1853_v11  ;;  %v457_v3 = vrot.slane %v449_v59, %v1853_v11  ;;  %v946_v52 = vcombine.low %v718_v55, %v722_v60  ;;  %v2176_v26 = vrot.slane %v2159_v1, %v1845_v7 }
  0x41   :  { %v1085_v29 = vmul.f32 %v945_v23, %v588_v53  ;;  %v464_v4 = vrot.slane %v450_v50, %v1853_v11  ;;  %v947_v5 = vcombine.low %v726_v61, %v730_v25  ;;  %v2186_v35 = vrot.slane %v2159_v1, %v1847_v8 }
  0x42   :  { %v1614_v19 = vcombine.low %v1606_v58, %v1613_v2  ;;  %v954_v20 = vrot.slane %v946_v52, %v1853_v11  ;;  %v2194_v21 = vrot.slane %v2159_v1, %v1849_v9  ;;  %v2198_v38 = vrot.slane %v2159_v1, %v1851_v10 }
  0x43   :  { %v1209_v40 = vcombine.high %v1085_v29, %v1085_v29  ;;  %v1216_v22 = vrot.slane %v1085_v29, %v1853_v11  ;;  %v465_v24 = vcombine.low %v457_v3, %v464_v4  ;;  %v961_v27 = vrot.slane %v947_v5, %v1853_v11 }
  0x44   :  { %1770 = vst [vmem:[#allocation2 + $0x28] sm:$0xff] %v1614_v19  ;;  %v466_v28 = vcombine.low %v2176_v26, %v2186_v35  ;;  %v467_v49 = vcombine.low %v2194_v21, %v2198_v38  ;;  %v734_v32 = vrot.slane %v2182_v6, %v1845_v7  ;;  %v738_v45 = vrot.slane %v2182_v6, %v1847_v8 }
  0x45   :  { %v1223_v33 = vrot.slane %v1209_v40, %v1853_v11  ;;  %v1224_v34 = vcombine.high %v1216_v22, %v1216_v22  ;;  %v1425_v36 = vadd.f32 %v1216_v22, %v2079_v43  ;;  %v589_v37 = vsub.f32 %v22_v39, %v465_v24 }
  0x46   :  { %v962_v41 = vcombine.low %v954_v20, %v961_v27  ;;  %v474_v56 = vrot.slane %v466_v28, %v1853_v11  ;;  %v481_v42 = vrot.slane %v467_v49, %v1853_v11  ;;  %v742_v44 = vrot.slane %v2182_v6, %v1849_v9 }
  0x47   :  { %v1225_v53 = vcombine.high %v1223_v33, %v1223_v33  ;;  %v1426_v46 = vadd.f32 %v1224_v34, %v2089_v57  ;;  %v1427_v47 = vadd.f32 %v1223_v33, %v2093_v15  ;;  %v746_v43 = vrot.slane %v2182_v6, %v1851_v10 }
  0x48   :  { %v1086_v16 = vmul.f32 %v962_v41, %v589_v37  ;;  %v482_v17 = vcombine.low %v474_v56, %v481_v42  ;;  %v963_v63 = vcombine.low %v734_v32, %v738_v45  ;;  %v2225_v55 = vrot.slane %v2159_v1, %v1855_v12  ;;  %v34_v32 = vld [vmem:[%s2462_s2 + $0x28] sm:$0xff] }
  0x49   :  { %v1428_v48 = vadd.f32 %v1225_v53, %v2105_v62  ;;  %v1615_v58 = vcombine.low %v1425_v36, %v1426_v46  ;;  %v964_v57 = vcombine.low %v742_v44, %v746_v43  ;;  %v2230_v15 = vrot.slane %v2159_v1, %v1857_v13  ;;  %v24_v37 = vld [vmem:[%s2460_s0 + $0x48] sm:$0xff] }
  0x4a   :  { %v1226_v59 = vcombine.high %v1086_v16, %v1086_v16  ;;  %v1233_v60 = vrot.slane %v1086_v16, %v1853_v11  ;;  %v590_v23 = vsub.f32 %v23_v18, %v482_v17  ;;  %v971_v50 = vrot.slane %v963_v63, %v1853_v11 }
  0x4b   :  { %v1616_v61 = vcombine.low %v1427_v47, %v1428_v48  ;;  %v1623_v25 = vrot.slane %v1615_v58, %v1853_v11  ;;  %v978_v2 = vrot.slane %v964_v57, %v1853_v11  ;;  %v2238_v62 = vrot.slane %v2159_v1, %v1859_v14 }
  0x4c   :  { %v1240_v3 = vrot.slane %v1226_v59, %v1853_v11  ;;  %v1241_v52 = vcombine.high %v1233_v60, %v1233_v60  ;;  %v1429_v29 = vadd.f32 %v1233_v60, %v2138_v31  ;;  %v2244_v4 = vrot.slane %v2159_v1, %v1890_v30 }
  0x4d   :  { %v1630_v5 = vrot.slane %v1616_v61, %v1853_v11  ;;  %v979_v19 = vcombine.low %v971_v50, %v978_v2  ;;  %v483_v39 = vcombine.low %v2225_v55, %v2230_v15  ;;  %v750_v20 = vrot.slane %v2182_v6, %v1855_v12 }
  0x4e   :  { %v1242_v40 = vcombine.high %v1240_v3, %v1240_v3  ;;  %v1430_v22 = vadd.f32 %v1241_v52, %v2143_v51  ;;  %v1431_v24 = vadd.f32 %v1240_v3, %v2148_v0  ;;  %v484_v31 = vcombine.low %v2238_v62, %v2244_v4 }
  0x4f   :  { %v1631_v27 = vcombine.low %v1623_v25, %v1630_v5  ;;  %v1087_v1 = vmul.f32 %v979_v19, %v590_v23  ;;  %v491_v28 = vrot.slane %v483_v39, %v1853_v11  ;;  %v754_v49 = vrot.slane %v2182_v6, %v1857_v13 }
  0x50   :  { %v1432_v45 = vadd.f32 %v1242_v40, %v2152_v54  ;;  %v1632_v33 = vcombine.low %v1429_v29, %v1430_v22  ;;  %v498_v51 = vrot.slane %v484_v31, %v1853_v11  ;;  %v758_v0 = vrot.slane %v2182_v6, %v1859_v14 }
  0x51   :  { %1771 = vst [vmem:[#allocation2 + $0x30] sm:$0xff] %v1631_v27  ;;  %v1243_v34 = vcombine.high %v1087_v1, %v1087_v1  ;;  %v1250_v36 = vrot.slane %v1087_v1, %v1853_v11  ;;  %v762_v41 = vrot.slane %v2182_v6, %v1890_v30  ;;  %v980_v56 = vcombine.low %v750_v20, %v754_v49  ;;  %v2282_v6 = vld [vmem:[%s2461_s1 + $0x28] sm:$0xff]  ;;  %v25_v49 = vld [vmem:[%s2460_s0 + $0x50] sm:$0xff] }
  0x52   :  { %v1633_v42 = vcombine.low %v1431_v24, %v1432_v45  ;;  %v1640_v54 = vrot.slane %v1632_v33, %v1853_v11  ;;  %v499_v44 = vcombine.low %v491_v28, %v498_v51  ;;  %v2273_v53 = vrot.slane %v34_v32, %v1845_v7 }
  0x53   :  { %v1257_v46 = vrot.slane %v1243_v34, %v1853_v11  ;;  %v1258_v47 = vcombine.high %v1250_v36, %v1250_v36  ;;  %v1433_v18 = vadd.f32 %v1250_v36, %v2176_v26  ;;  %v981_v43 = vcombine.low %v758_v0, %v762_v41 }
  0x54   :  { %v1647_v16 = vrot.slane %v1633_v42, %v1853_v11  ;;  %v591_v17 = vsub.f32 %v24_v37, %v499_v44  ;;  %v988_v63 = vrot.slane %v980_v56, %v1853_v11  ;;  %v2285_v48 = vrot.slane %v34_v32, %v1847_v8 }
  0x55   :  { %v1259_v58 = vcombine.high %v1257_v46, %v1257_v46  ;;  %v1434_v57 = vadd.f32 %v1258_v47, %v2186_v35  ;;  %v1435_v59 = vadd.f32 %v1257_v46, %v2194_v21  ;;  %v995_v26 = vrot.slane %v981_v43, %v1853_v11 }
  0x56   :  { %v1648_v60 = vcombine.low %v1640_v54, %v1647_v16  ;;  %v2291_v23 = vrot.slane %v34_v32, %v1849_v9  ;;  %v2294_v50 = vrot.slane %v34_v32, %v1851_v10  ;;  %v500_v61 = vcombine.low %v2273_v53, %v2285_v48 }
  0x57   :  { %v1436_v25 = vadd.f32 %v1259_v58, %v2198_v38  ;;  %v1649_v2 = vcombine.low %v1433_v18, %v1434_v57  ;;  %v996_v3 = vcombine.low %v988_v63, %v995_v26  ;;  %v766_v35 = vrot.slane %v2282_v6, %v1845_v7 }
  0x58   :  { %1772 = vst [vmem:[#allocation2 + $0x38] sm:$0xff] %v1648_v60  ;;  %v501_v21 = vcombine.low %v2291_v23, %v2294_v50  ;;  %v508_v52 = vrot.slane %v500_v61, %v1853_v11  ;;  %v770_v29 = vrot.slane %v2282_v6, %v1847_v8  ;;  %v774_v5 = vrot.slane %v2282_v6, %v1849_v9 }
  0x59   :  { %v1650_v19 = vcombine.low %v1435_v59, %v1436_v25  ;;  %v1657_v38 = vrot.slane %v1649_v2, %v1853_v11  ;;  %v1088_v39 = vmul.f32 %v996_v3, %v591_v17  ;;  %v778_v20 = vrot.slane %v2282_v6, %v1851_v10 }
  0x5a   :  { %v515_v40 = vrot.slane %v501_v21, %v1853_v11  ;;  %v997_v22 = vcombine.low %v766_v35, %v770_v29  ;;  %v2313_v24 = vrot.slane %v34_v32, %v1855_v12  ;;  %v2316_v31 = vrot.slane %v34_v32, %v1857_v13 }
  0x5b   :  { %v1664_v27 = vrot.slane %v1650_v19, %v1853_v11  ;;  %v1260_v1 = vcombine.high %v1088_v39, %v1088_v39  ;;  %v1267_v28 = vrot.slane %v1088_v39, %v1853_v11  ;;  %v998_v45 = vcombine.low %v774_v5, %v778_v20  ;;  %v2372_v19 = vld [vmem:[%s2461_s1 + $0x30] sm:$0xff] }
  0x5c   :  { %v516_v33 = vcombine.low %v508_v52, %v515_v40  ;;  %v1005_v51 = vrot.slane %v997_v22, %v1853_v11  ;;  %v2325_v0 = vrot.slane %v34_v32, %v1859_v14  ;;  %v2328_v34 = vrot.slane %v34_v32, %v1890_v30 }
  0x5d   :  { %v1665_v36 = vcombine.low %v1657_v38, %v1664_v27  ;;  %v1274_v37 = vrot.slane %v1260_v1, %v1853_v11  ;;  %v1275_v41 = vcombine.high %v1267_v28, %v1267_v28  ;;  %v1437_v56 = vadd.f32 %v1267_v28, %v2225_v55  ;;  %v2344_v55 = vld [vmem:[%s2462_s2 + $0x30] sm:$0xff] }
  0x5e   :  { %v592_v42 = vsub.f32 %v25_v49, %v516_v33  ;;  %v1012_v54 = vrot.slane %v998_v45, %v1853_v11  ;;  %v517_v44 = vcombine.low %v2313_v24, %v2316_v31  ;;  %v518_v46 = vcombine.low %v2325_v0, %v2328_v34 }
  0x5f   :  { %1773 = vst [vmem:[#allocation2 + $0x40] sm:$0xff] %v1665_v36  ;;  %v1276_v47 = vcombine.high %v1274_v37, %v1274_v37  ;;  %v1438_v32 = vadd.f32 %v1275_v41, %v2230_v15  ;;  %v1439_v18 = vadd.f32 %v1274_v37, %v2238_v62  ;;  %v782_v43 = vrot.slane %v2282_v6, %v1855_v12  ;;  %v26_v62 = vld [vmem:[%s2460_s0 + $0x58] sm:$0xff] }
  0x60   :  { %v1013_v16 = vcombine.low %v1005_v51, %v1012_v54  ;;  %v525_v17 = vrot.slane %v517_v44, %v1853_v11  ;;  %v532_v63 = vrot.slane %v518_v46, %v1853_v11  ;;  %v786_v58 = vrot.slane %v2282_v6, %v1857_v13 }
  0x61   :  { %v1440_v15 = vadd.f32 %v1276_v47, %v2244_v4  ;;  %v1666_v57 = vcombine.low %v1437_v56, %v1438_v32  ;;  %v790_v59 = vrot.slane %v2282_v6, %v1859_v14  ;;  %v794_v26 = vrot.slane %v2282_v6, %v1890_v30 }
  0x62   :  { %v1089_v60 = vmul.f32 %v1013_v16, %v592_v42  ;;  %v533_v61 = vcombine.low %v525_v17, %v532_v63  ;;  %v1014_v25 = vcombine.low %v782_v43, %v786_v58  ;;  %v2360_v2 = vrot.slane %v2344_v55, %v1845_v7 }
  0x63   :  { %v1667_v3 = vcombine.low %v1439_v18, %v1440_v15  ;;  %v1674_v4 = vrot.slane %v1666_v57, %v1853_v11  ;;  %v1015_v35 = vcombine.low %v790_v59, %v794_v26  ;;  %v2365_v21 = vrot.slane %v2344_v55, %v1847_v8 }
  0x64   :  { %v1277_v52 = vcombine.high %v1089_v60, %v1089_v60  ;;  %v1284_v29 = vrot.slane %v1089_v60, %v1853_v11  ;;  %v593_v5 = vsub.f32 %v26_v62, %v533_v61  ;;  %v1022_v6 = vrot.slane %v1014_v25, %v1853_v11 }
  0x65   :  { %v1681_v38 = vrot.slane %v1667_v3, %v1853_v11  ;;  %v1029_v39 = vrot.slane %v1015_v35, %v1853_v11  ;;  %v2378_v20 = vrot.slane %v2344_v55, %v1849_v9  ;;  %v2382_v40 = vrot.slane %v2344_v55, %v1851_v10 }
  0x66   :  { %v1291_v22 = vrot.slane %v1277_v52, %v1853_v11  ;;  %v1292_v27 = vcombine.high %v1284_v29, %v1284_v29  ;;  %v1441_v1 = vadd.f32 %v1284_v29, %v2273_v53  ;;  %v534_v28 = vcombine.low %v2360_v2, %v2365_v21 }
  0x67   :  { %v1682_v49 = vcombine.low %v1674_v4, %v1681_v38  ;;  %v1030_v45 = vcombine.low %v1022_v6, %v1029_v39  ;;  %v535_v33 = vcombine.low %v2378_v20, %v2382_v40  ;;  %v798_v51 = vrot.slane %v2372_v19, %v1845_v7 }
  0x68   :  { %v1293_v36 = vcombine.high %v1291_v22, %v1291_v22  ;;  %v1442_v37 = vadd.f32 %v1292_v27, %v2285_v48  ;;  %v1443_v41 = vadd.f32 %v1291_v22, %v2291_v23  ;;  %v542_v56 = vrot.slane %v534_v28, %v1853_v11  ;;  %v27_v48 = vld [vmem:[%s2460_s0 + $0x60] sm:$0xff] }
  0x69   :  { %1774 = vst [vmem:[#allocation2 + $0x48] sm:$0xff] %v1682_v49  ;;  %v1090_v53 = vmul.f32 %v1030_v45, %v593_v5  ;;  %v549_v42 = vrot.slane %v535_v33, %v1853_v11  ;;  %v802_v54 = vrot.slane %v2372_v19, %v1847_v8  ;;  %v806_v44 = vrot.slane %v2372_v19, %v1849_v9 }
  0x6a   :  { %v1444_v46 = vadd.f32 %v1293_v36, %v2294_v50  ;;  %v1683_v7 = vcombine.low %v1441_v1, %v1442_v37  ;;  %v810_v23 = vrot.slane %v2372_v19, %v1851_v10  ;;  %v2408_v47 = vrot.slane %v2344_v55, %v1855_v12 }
  0x6b   :  { %v1294_v32 = vcombine.high %v1090_v53, %v1090_v53  ;;  %v1301_v8 = vrot.slane %v1090_v53, %v1853_v11  ;;  %v550_v18 = vcombine.low %v542_v56, %v549_v42  ;;  %v1031_v43 = vcombine.low %v798_v51, %v802_v54 }
  0x6c   :  { %v1684_v9 = vcombine.low %v1443_v41, %v1444_v46  ;;  %v1691_v50 = vrot.slane %v1683_v7, %v1853_v11  ;;  %v1032_v16 = vcombine.low %v806_v44, %v810_v23  ;;  %v265_v17 = vrot.slane %v2344_v55, %v1857_v13 }
  0x6d   :  { %v1308_v63 = vrot.slane %v1294_v32, %v1853_v11  ;;  %v1309_v58 = vcombine.high %v1301_v8, %v1301_v8  ;;  %v1445_v10 = vadd.f32 %v1301_v8, %v2313_v24  ;;  %v594_v15 = vsub.f32 %v27_v48, %v550_v18 }
  0x6e   :  { %v1698_v57 = vrot.slane %v1684_v9, %v1853_v11  ;;  %v1039_v62 = vrot.slane %v1031_v43, %v1853_v11  ;;  %v1046_v59 = vrot.slane %v1032_v16, %v1853_v11  ;;  %v269_v26 = vrot.slane %v2344_v55, %v1859_v14 }
  0x6f   :  { %v1310_v60 = vcombine.high %v1308_v63, %v1308_v63  ;;  %v1446_v61 = vadd.f32 %v1309_v58, %v2316_v31  ;;  %v1447_v25 = vadd.f32 %v1308_v63, %v2325_v0  ;;  %v273_v3 = vrot.slane %v2344_v55, %v1890_v30 }
  0x70   :  { %v1699_v4 = vcombine.low %v1691_v50, %v1698_v57  ;;  %v1047_v24 = vcombine.low %v1039_v62, %v1046_v59  ;;  %v551_v35 = vcombine.low %v2408_v47, %v265_v17  ;;  %v814_v52 = vrot.slane %v2372_v19, %v1855_v12 }
  0x71   :  { %v1448_v29 = vadd.f32 %v1310_v60, %v2328_v34  ;;  %v1700_v5 = vcombine.low %v1445_v10, %v1446_v61  ;;  %v552_v6 = vcombine.low %v269_v26, %v273_v3  ;;  %v818_v38 = vrot.slane %v2372_v19, %v1857_v13  ;;  %v28_v13 = vld [vmem:[%s2460_s0 + $0x68] sm:$0xff]  ;;  %s1818_s0 = smov [#allocation2]  }
  0x72   :  { %1775 = vst [vmem:[#allocation2 + $0x50] sm:$0xff] %v1699_v4  ;;  %v1091_v31 = vmul.f32 %v1047_v24, %v594_v15  ;;  %v559_v0 = vrot.slane %v551_v35, %v1853_v11  ;;  %v822_v55 = vrot.slane %v2372_v19, %v1859_v14  ;;  %v826_v39 = vrot.slane %v2372_v19, %v1890_v30  ;;  %s1785_s12 = sshll.u32 %s1818_s0, 4  ;;  %s1786_s12 = int_to_ptr.vmem [resolvable:$true] %s1785_s12 }
  0x73   :  { %v1701_v22 = vcombine.low %v1447_v25, %v1448_v29  ;;  %v1708_v12 = vrot.slane %v1700_v5, %v1853_v11  ;;  %v566_v34 = vrot.slane %v552_v6, %v1853_v11  ;;  %v1048_v27 = vcombine.low %v814_v52, %v818_v38  ;;  %s1795_s13 = scalar_lea.vmem %s1786_s12, 1792  ;;  %p1800_p1 = scmp.lt.s32.totalorder %s1786_s12, %s1786_s12 }
  0x74   :  { %v1311_v1 = vcombine.high %v1091_v31, %v1091_v31  ;;  %v1318_v28 = vrot.slane %v1091_v31, %v1853_v11  ;;  %v1049_v49 = vcombine.low %v822_v55, %v826_v39  ;;  %p1796_p0 = scmp.ne.s32.totalorder %s1786_s12, %s1795_s13  ;;  %p1801_p2 = scmp.lt.s32.totalorder %s1795_s13, %s1795_s13 }
  0x75   :  { %v1715_v45 = vrot.slane %v1701_v22, %v1853_v11  ;;  %v567_v14 = vcombine.low %v559_v0, %v566_v34  ;;  %v1056_v33 = vrot.slane %v1048_v27, %v1853_v11 }
  0x76   :  { %v1325_v30 = vrot.slane %v1311_v1, %v1853_v11  ;;  %v1326_v19 = vcombine.high %v1318_v28, %v1318_v28  ;;  %v1449_v51 = vadd.f32 %v1318_v28, %v2360_v2  ;;  %v1063_v36 = vrot.slane %v1049_v49, %v1853_v11  ;;  %p1802_p3 = por %p1801_p2, %p1800_p1 }
  0x77   :  { %v1716_v37 = vcombine.low %v1708_v12, %v1715_v45  ;;  %v595_v41 = vsub.f32 %v28_v13, %v567_v14 }
  0x78   :  { %v1327_v56 = vcombine.high %v1325_v30, %v1325_v30  ;;  %v1450_v53 = vadd.f32 %v1326_v19, %v2365_v21  ;;  %v1451_v42 = vadd.f32 %v1325_v30, %v2378_v20  ;;  %v1064_v54 = vcombine.low %v1056_v33, %v1063_v36  ;;  %p1803_p4 = pnand %p1802_p3, %p1796_p0 }
  0x79   :  { %1776 = vst [vmem:[#allocation2 + $0x58] sm:$0xff] %v1716_v37 }
  0x7a   :  { %v1452_v44 = vadd.f32 %v1327_v56, %v2382_v40  ;;  %v1717_v46 = vcombine.low %v1449_v51, %v1450_v53  ;;  %v1092_v7 = vmul.f32 %v1064_v54, %v595_v41 }
  0x7c   :  { %v1718_v48 = vcombine.low %v1451_v42, %v1452_v44  ;;  %v1725_v23 = vrot.slane %v1717_v46, %v1853_v11  ;;  %v1328_v32 = vcombine.high %v1092_v7, %v1092_v7  ;;  %v1335_v2 = vrot.slane %v1092_v7, %v1853_v11 }
  0x7e   :  { %v1732_v8 = vrot.slane %v1718_v48, %v1853_v11  ;;  %v1342_v18 = vrot.slane %v1328_v32, %v1853_v11  ;;  %v1343_v43 = vcombine.high %v1335_v2, %v1335_v2  ;;  %v1453_v21 = vadd.f32 %v1335_v2, %v2408_v47 }
  0x80   :  { %v1733_v20 = vcombine.low %v1725_v23, %v1732_v8  ;;  %v1344_v9 = vcombine.high %v1342_v18, %v1342_v18  ;;  %v1454_v50 = vadd.f32 %v1343_v43, %v265_v17  ;;  %v1455_v16 = vadd.f32 %v1342_v18, %v269_v26 }
  0x82   :  { %1777 = vst [vmem:[#allocation2 + $0x60] sm:$0xff] %v1733_v20  ;;  %v1456_v40 = vadd.f32 %v1344_v9, %v273_v3  ;;  %v1734_v63 = vcombine.low %v1453_v21, %v1454_v50 }
  0x84   :  { %v1735_v58 = vcombine.low %v1455_v16, %v1456_v40  ;;  %v1742_v10 = vrot.slane %v1734_v63, %v1853_v11 }
  0x86   :  { %v1749_v15 = vrot.slane %v1735_v58, %v1853_v11 }
  0x88   :  { %v1750_v57 = vcombine.low %v1742_v10, %v1749_v15 }
  0x8a   :  { %1778 = vst [vmem:[#allocation2 + $0x68] sm:$0xff] %v1750_v57 }
  0x8b   :  { %1806 = shalt.err (!%p1803_p4)
}
  0x8c   :  { %1788 = dma.vmem_to_hbm [thread:$0]  %s1786_s12, 1792, %s2463_s3, [#allocation3]  }
  0x8d   :  { %1815 = dma.done.wait [#allocation3], 1792  }
  0x8e   :  { %1816 = vsyncadd [#allocation3], 4294965504 }
  0x8f   :  { %1792 = vsyncpa [#allocation3], 1 }

</bundles_post_ra>
